<compile_context>
chip_gen: v7x
topology: tpu7x:2x2x1
jax: 0.10.0
libtpu: 0.0.40
codegen_flags: <defaults>
</compile_context>

<pallas_src>
import functools

import jax
import jax.numpy as jnp
from jax.experimental import pallas as pl
from jax.experimental.pallas import tpu as pltpu

NUM_CLASSES = 11   # nn.Embedding(11, 64)
EMB_DIM = 64
_CHUNK = 256       # in-kernel sub-block (rows) for the one-hot + matmul


def _round_up(x, m):
    return ((x + m - 1) // m) * m


# --------------------------------- kernel ---------------------------------- #
def _mle_kernel(idx_ref, table_ref, out_ref, *, num_classes, chunk):
    """idx_ref: (TB, 2) int32 [y|s]; table_ref: (K, 2E); out_ref: (TB, 2E)."""
    TB = out_ref.shape[0]
    K = table_ref.shape[0]              # padded one-hot width (multiple of 8)
    n_chunks = TB // chunk

    table = table_ref[...]
    # Hoisted out of the chunk loop (JAX does not CSE broadcast_in_dim).
    cols = jax.lax.broadcasted_iota(jnp.int32, (chunk, K), 1)

    def body(c, carry):
        r0 = pl.multiple_of(c * chunk, chunk)
        idx = idx_ref[pl.ds(r0, chunk), :]                 # (chunk, 2) int32
        y = idx[:, 0:1]                                    # (chunk, 1)
        s = idx[:, 1:2] + num_classes                      # (chunk, 1)
        # Combined one-hot: cols j<V hit when j==y, cols V<=j<2V when j==s+V.
        onehot = ((cols == y) | (cols == s)).astype(table.dtype)
        # One MXU matmul against the block-diagonal table == gather + concat.
        out_ref[pl.ds(r0, chunk), :] = jnp.dot(
            onehot, table, preferred_element_type=jnp.float32
        ).astype(out_ref.dtype)
        return carry

    jax.lax.fori_loop(0, n_chunks, body, 0, unroll=True)


# --------------------------------- wrapper ---------------------------------- #
def multi_label_encoder_forward(y, s, emb1, emb2, *, batch_tile=None,
                                out_dtype=None):
    B = y.shape[0]
    V, E = emb1.shape
    assert emb2.shape == (V, E)
    out_dtype = emb1.dtype if out_dtype is None else out_dtype

    K = _round_up(2 * V, 8)      # 22 -> 24 rows (sublane-aligned contraction)
    N = 2 * E                    # 128: fully lane-dense output width

    # Block-diagonal packed table, padded with zero rows that are never hit.
    table = jnp.zeros((K, N), emb1.dtype)
    table = table.at[:V, :E].set(emb1)
    table = table.at[V:2 * V, E:].set(emb2)

    # ---- batch tile selection (big tiles; never a giant whole-batch block) --
    if batch_tile is not None:
        if batch_tile % 8 != 0:
            raise ValueError("batch_tile must be a multiple of 8")
        if batch_tile > _CHUNK and batch_tile % _CHUNK != 0:
            raise ValueError(f"batch_tile > {_CHUNK} must be a multiple of it")
        TB = batch_tile
    else:
        B8 = _round_up(B, 8)
        if B8 <= _CHUNK:
            TB = B8                      # tiny batch: one step, one chunk
        elif B8 <= 2048:
            TB = 512                     # 2 chunks per step
        else:
            TB = 1024                    # large batch: >=2 steps for megacore

    B_pad = _round_up(B, TB)             # pad ragged batches; slice on return
    grid = (B_pad // TB,)

    # Single packed index input: one DMA stream instead of two.
    idx = jnp.zeros((B_pad, 2), jnp.int32)
    idx = idx.at[:B, 0].set(y.astype(jnp.int32))
    idx = idx.at[:B, 1].set(s.astype(jnp.int32))

    tbl_bytes = int(jnp.dtype(emb1.dtype).itemsize)
    out_bytes = int(jnp.dtype(out_dtype).itemsize)
    cost = pl.CostEstimate(
        flops=2 * B_pad * K * N,
        transcendentals=0,
        bytes_accessed=(table.size * tbl_bytes + idx.size * 4
                        + B_pad * N * out_bytes),
    )

    out = pl.pallas_call(
        functools.partial(_mle_kernel, num_classes=V, chunk=min(TB, _CHUNK)),
        out_shape=jax.ShapeDtypeStruct((B_pad, N), out_dtype),
        grid=grid,
        in_specs=[
            pl.BlockSpec((TB, 2), lambda i: (i, 0)),    # packed [y|s] indices
            pl.BlockSpec((K, N), lambda i: (0, 0)),     # tiny resident table
        ],
        out_specs=pl.BlockSpec((TB, N), lambda i: (i, 0)),
        compiler_params=pltpu.CompilerParams(
            dimension_semantics=("parallel",)),
        cost_estimate=cost,
    )(idx, table)
    return out[:B]


# ------------------------------ pure-JAX ref -------------------------------- #
def reference_forward(y, s, emb1, emb2):
    y1 = emb1[y]                      # [B, 64]
    y2 = emb2[s]                      # [B, 64]
    return jnp.concatenate([y1, y2], axis=1)


if __name__ == "__main__":
    key = jax.random.PRNGKey(0)
    ky, ks, k1, k2 = jax.random.split(key, 4)

    emb1 = jax.random.normal(k1, (NUM_CLASSES, EMB_DIM), jnp.float32)
    emb2 = jax.random.normal(k2, (NUM_CLASSES, EMB_DIM), jnp.float32)

    # Small main check (B=8) plus a ragged batch (B=300) that exercises
    # padding, the 512-row tile and the 256-row in-kernel chunk loop.
    for B in (8, 300):
        yk = jax.random.fold_in(ky, B)
        sk = jax.random.fold_in(ks, B)
        y = jax.random.randint(yk, (B,), 0, NUM_CLASSES, jnp.int32)
        s = jax.random.randint(sk, (B,), 0, NUM_CLASSES, jnp.int32)

        out = jax.block_until_ready(multi_label_encoder_forward(y, s, emb1, emb2))
        ref = jax.block_until_ready(reference_forward(y, s, emb1, emb2))

        assert out.shape == (B, 2 * EMB_DIM), out.shape
        max_err = float(jnp.max(jnp.abs(out - ref)))
        if not bool(jnp.allclose(out, ref, rtol=1e-6, atol=1e-6)):
            raise AssertionError(
                f"kernel mismatch vs reference (B={B}), max abs err={max_err}")

    print("KERNEL_OK")
</pallas_src>

<mosaic_0001>
module attributes {stable_mosaic.version = 11 : i64} {
  func.func @_mle_kernel(%arg0: i32, %arg1: memref<8x2xi32, #tpu.memory_space<vmem>>, %arg2: memref<24x128xf32, #tpu.memory_space<vmem>>, %arg3: memref<8x128xf32, #tpu.memory_space<vmem>>) attributes {dimension_semantics = [#tpu.dimension_semantics<parallel>], iteration_bounds = array<i64: 1>, scalar_prefetch = 0 : i64, scratch_operands = 0 : i64, tpu.core_type = #tpu.core_type<tc>, window_params = [{transform_indices = @transform_0, window_bounds = array<i64: 8, 2>}, {pipeline_mode = #tpu.pipeline_mode<synchronous>, transform_indices = @transform_1, window_bounds = array<i64: 24, 128>}, {transform_indices = @transform_2, window_bounds = array<i64: 8, 128>}]} {
    %c0 = arith.constant 0 : index
    %c0_0 = arith.constant 0 : index
    %0 = vector.load %arg2[%c0, %c0_0] : memref<24x128xf32, #tpu.memory_space<vmem>>, vector<24x128xf32>
    %1 = tpu.iota {dimensions = array<i32: 1>} : vector<8x24xi32>
    %c0_i32 = arith.constant 0 : i32
    %c8_i32 = arith.constant 8 : i32
    %2 = arith.muli %c0_i32, %c8_i32 : i32
    %3 = tpu.assume_multiple %2, 8 : i32
    %4 = arith.index_cast %3 : i32 to index
    %c0_1 = arith.constant 0 : index
    %5 = vector.load %arg1[%4, %c0_1] : memref<8x2xi32, #tpu.memory_space<vmem>>, vector<8x2xi32>
    %6 = vector.extract_strided_slice %5 {offsets = [0, 0], sizes = [8, 1], strides = [1, 1]} : vector<8x2xi32> to vector<8x1xi32>
    %7 = vector.extract_strided_slice %5 {offsets = [0, 1], sizes = [8, 1], strides = [1, 1]} : vector<8x2xi32> to vector<8x1xi32>
    %c11_i32 = arith.constant 11 : i32
    %8 = vector.broadcast %c11_i32 : i32 to vector<8x1xi32>
    %9 = arith.addi %7, %8 : vector<8x1xi32>
    %10 = vector.broadcast %6 : vector<8x1xi32> to vector<8x24xi32>
    %11 = arith.cmpi eq, %1, %10 : vector<8x24xi32>
    %12 = vector.broadcast %9 : vector<8x1xi32> to vector<8x24xi32>
    %13 = arith.cmpi eq, %1, %12 : vector<8x24xi32>
    %14 = arith.ori %11, %13 : vector<8x24xi1>
    %15 = arith.extui %14 : vector<8x24xi1> to vector<8x24xi32>
    %16 = arith.sitofp %15 : vector<8x24xi32> to vector<8x24xf32>
    %cst = arith.constant dense<0.000000e+00> : vector<8x128xf32>
    %17 = tpu.matmul %16, %0, %cst {dimension_numbers = #tpu.dot_dimension_numbers<[1], [0], [0], [1], [0, 0, 1, 1], [], []>} : vector<8x24xf32>, vector<24x128xf32>, vector<8x128xf32> -> vector<8x128xf32>
    %18 = arith.index_cast %3 : i32 to index
    %c0_2 = arith.constant 0 : index
    %19 = vector.load %arg3[%18, %c0_2] : memref<8x128xf32, #tpu.memory_space<vmem>>, vector<8x128xf32>
    tpu.vector_store %arg3[%18, %c0_2], %17 {strides = array<i32>} : memref<8x128xf32, #tpu.memory_space<vmem>>, vector<8x128xf32>,
    %c1_i32 = arith.constant 1 : i32
    return
  }
  func.func @transform_0(%arg0: i32) -> (i32, i32) {
    %c0_i32 = arith.constant 0 : i32
    %c0_i32_0 = arith.constant 0 : i32
    return %arg0, %c0_i32 : i32, i32
  }
  func.func @transform_1(%arg0: i32) -> (i32, i32) {
    %c0_i32 = arith.constant 0 : i32
    %c0_i32_0 = arith.constant 0 : i32
    %c0_i32_1 = arith.constant 0 : i32
    return %c0_i32, %c0_i32_0 : i32, i32
  }
  func.func @transform_2(%arg0: i32) -> (i32, i32) {
    %c0_i32 = arith.constant 0 : i32
    %c0_i32_0 = arith.constant 0 : i32
    return %arg0, %c0_i32 : i32, i32
  }
}

</mosaic_0001>

<bundles_post_ra>
// kernel: tpu_custom_call.1
= control target key start
LH: loop header
LB: loop body
LE: loop exit
PB: predicated region body
PF: predicated region fallthrough
CT: control target
= control target key end

     0   :  { %7 = vsyncpa [#allocation3], 0  ;;  %s262_s0 = inlined_call_operand.vmem [shape: s32[8,2], index: 0, kind: input, shape index: {}]   ;;  %s263_s1 = inlined_call_operand.hbm [shape: f32[24,128], index: 1, kind: input, shape index: {}]   ;;  %s264_s2 = inlined_call_operand.hbm [shape: f32[8,128], index: 2, kind: output, shape index: {}]  }
   0x1   :  { %8 = vsyncpa [#allocation4], 0  ;;  %s211_s9 = smov [#allocation2]   ;;  %s163_s13 = scalar_lea.hbm %s263_s1, 384 }
   0x2   :  { %s16_s10 = sshll.u32 %s211_s9, 4  ;;  %p164_p0 = scmp.ne.s32.totalorder %s263_s1, %s163_s13  ;;  %s17_s10 = int_to_ptr.vmem [resolvable:$true] %s16_s10 }
   0x3   :  { %p167_p1 = scmp.lt.u32.totalorder %s163_s13, %s263_s1 }
   0x5   :  { %p169_p2 = pnand %p167_p1, %p164_p0 }
   0x7   :  { %172 = shalt.err (!%p169_p2)
}
   0x8   :  { %s173_s18 = scalar_lea.vmem %s17_s10, 384  ;;  %p178_p4 = scmp.lt.s32.totalorder %s17_s10, %s17_s10 }
   0x9   :  { %p174_p3 = scmp.ne.s32.totalorder %s17_s10, %s173_s18  ;;  %p179_p5 = scmp.lt.s32.totalorder %s173_s18, %s173_s18 }
   0xb   :  { %p180_p6 = por %p179_p5, %p178_p4 }
   0xd   :  { %p181_p7 = pnand %p180_p6, %p174_p3 }
   0xf   :  { %184 = shalt.err (!%p181_p7)
}
  0x10   :  { %s212_s19 = smov 128   ;;  %s213_s20 = smov 8  }
  0x11   :  { %22 = dma.hbm_to_vmem [thread:$0]  %s263_s1, 384, %s17_s10, [#allocation3], %s212_s19, %s212_s19, %s213_s20  }
  0x12   :  { %207 = dma.done.wait [#allocation3], 384  }
  0x13   :  { %208 = vsyncadd [#allocation3], 4294966912  ;;  %v214_v0 = vmov 0   ;;  %v31_v1 = vld [vmem:[%s262_s0] sm:$0xff]  ;;  %v27_v3 = vld [vmem:[#allocation2 + $0x8] sm:$0xff]  ;;  %v215_v5 = vmov 0.0|0.0   ;;  %v29_v10 = vlaneseq }
  0x14   :  { %161 = vset.pattern.permute.xlu0 %v214_v0  ;;  %v26_v2 = vld [vmem:[#allocation2] sm:$0xff]  ;;  %v32_v4 = vadd.s32 11, %v31_v1  ;;  %149 = vmatprep.subr.bf16.mxu0 %v215_v5  ;;  %v216_v7 = vmov 1   ;;  %v217_v8 = vmov 0.0   ;;  %v28_v9 = vld [vmem:[#allocation2 + $0x10] sm:$0xff]  ;;  %vm218_vm0 = vmmov 0  }
  0x15   :  { %34 = vperm.xlu0 %161, %v31_v1   ;;  %v150_v6 = vpack.c.bf16 %v27_v3, %v26_v2  ;;  %146 = vmatprep.mubr.msk.f32.mxu0 %vm218_vm0, %v217_v8  ;;  %v30_v12 = vand.u32 127, %v29_v10  ;;  %vm44_vm3 = vcmask 195584   ;;  %s219_s0 = smov [#allocation5]  }
  0x16   :  { %s125_s1 = sshll.u32 %s219_s0, 4  ;;  %s126_s1 = int_to_ptr.vmem [resolvable:$true] %s125_s1 }
  0x17   :  { %151 = vmatpush3.bf16.msra.mxu0 %v150_v6  ;;  %s185_s25 = scalar_lea.vmem %s126_s1, 128  ;;  %p190_p9 = scmp.lt.s32.totalorder %s126_s1, %s126_s1 }
  0x18   :  { %144 = vmatprep.subr.mxu0 %v217_v8  ;;  %p186_p8 = scmp.ne.s32.totalorder %s126_s1, %s185_s25  ;;  %p191_p10 = scmp.lt.s32.totalorder %s185_s25, %s185_s25 }
  0x19   :  { %162 = vset.pattern.permute.xlu0 %v216_v7 }
  0x1a   :  { %38 = vperm.xlu0 %162, %v32_v4   ;;  %p192_p11 = por %p191_p10, %p190_p9 }
  0x1b   :  { %145 = vmatpush3.msra.mxu0 %v28_v9 }
  0x1c   :  { %p193_p12 = pnand %p192_p11, %p186_p8 }
  0x94   :  { %v35_v11 = vpop.permute.xlu0 %34 }
  0x95   :  { %vm36_vm1 = vcmp.eq.s32.totalorder %v30_v12, %v35_v11 }
  0x99   :  { %v39_v13 = vpop.permute.xlu0 %38 }
  0x9a   :  { %vm40_vm2 = vcmp.eq.s32.totalorder %v30_v12, %v39_v13 }
  0x9b   :  { %vm41_vm4 = vmor %vm36_vm1, %vm40_vm2 }
  0x9c   :  { %v134_v14 = vsel %vm41_vm4, 1.0, %v217_v8 }
  0x9d   :  { %147 = vmatmul.mubr.msk.f32.vlgmr.msra.gmra.mrb[0].mxu0 %vm44_vm3, %v134_v14 }
 0x170   :  { %v114_v15 = vpop.f32.mrb[0].mxu0 }
 0x171   :  { %118 = vst [vmem:[#allocation5] sm:$0xff] %v114_v15  ;;  %v148_v16 = vpop.f32.mrb[1].mxu0 }
 0x172   :  { %196 = shalt.err (!%p193_p12)
}
 0x173   :  { %s197_s28 = scalar_lea.hbm %s264_s2, 128 }
 0x174   :  { %p198_p13 = scmp.ne.s32.totalorder %s264_s2, %s197_s28  ;;  %p201_p0 = scmp.lt.u32.totalorder %s197_s28, %s264_s2 }
 0x176   :  { %p203_p1 = pnand %p201_p0, %p198_p13 }
 0x178   :  { %206 = shalt.err (!%p203_p1)
}
 0x179   :  { %128 = dma.vmem_to_hbm [thread:$0]  %s126_s1, 128, %s264_s2, [#allocation4]  }
 0x17a   :  { %209 = dma.done.wait [#allocation4], 128  }
 0x17b   :  { %210 = vsyncadd [#allocation4], 4294967168 }
 0x17c   :  { %132 = vsyncpa [#allocation3], 1 }
 0x17d   :  { %133 = vsyncpa [#allocation4], 1 }

</bundles_post_ra>
